<compile_context>
chip_gen: v6e
topology: v6e:2x2x1
jax: 0.10.0
libtpu: 0.0.40
codegen_flags: <defaults>
</compile_context>

<pallas_src>
import functools

import jax
import jax.numpy as jnp
from jax.experimental import pallas as pl
from jax.experimental.pallas import tpu as pltpu


def _fused_linear_kernel(x_ref, w_ref, b_ref, o_ref, acc_ref, *, apply_relu):
    """o = x @ w + b (optionally followed by ReLU), K-reduction on grid axis 2."""
    k = pl.program_id(2)

    @pl.when(k == 0)
    def _():
        acc_ref[...] = jnp.zeros_like(acc_ref)

    acc_ref[...] += jnp.dot(
        x_ref[...], w_ref[...], preferred_element_type=jnp.float32
    )

    @pl.when(k == pl.num_programs(2) - 1)
    def _():
        out = acc_ref[...] + b_ref[...]                    # bias broadcast over rows
        if apply_relu:                                     # fused ReLU epilogue (VPU)
            out = jnp.maximum(out, jnp.zeros((), out.dtype))
        o_ref[...] = out.astype(o_ref.dtype)


def _pick_block(dim, candidates=(512, 256, 128)):
    """Largest aligned tile that evenly divides `dim`; otherwise the full dim
    (a block equal to the full array dim is always legal on TPU)."""
    for t in candidates:
        if dim % t == 0:
            return t
    return dim


def fused_linear(x, w, b, *, apply_relu=False):
    """Pallas Linear with optional fused ReLU: y = relu?(x @ w + b)."""
    M, K = x.shape
    K2, N = w.shape
    assert K == K2 and b.shape == (N,)
    b2d = b.reshape(1, N)

    tm = _pick_block(M)
    tn = _pick_block(N)
    tk = _pick_block(K)
    grid = (M // tm, N // tn, K // tk)

    kernel = functools.partial(_fused_linear_kernel, apply_relu=apply_relu)

    return pl.pallas_call(
        kernel,
        out_shape=jax.ShapeDtypeStruct((M, N), x.dtype),
        grid_spec=pltpu.PrefetchScalarGridSpec(
            num_scalar_prefetch=0,
            grid=grid,
            in_specs=[
                pl.BlockSpec((tm, tk), lambda i, j, k: (i, k)),
                pl.BlockSpec((tk, tn), lambda i, j, k: (k, j)),
                pl.BlockSpec((1, tn), lambda i, j, k: (0, j)),
            ],
            out_specs=pl.BlockSpec((tm, tn), lambda i, j, k: (i, j)),
            scratch_shapes=[pltpu.VMEM((tm, tn), jnp.float32)],
        ),
        compiler_params=pltpu.CompilerParams(
            dimension_semantics=("parallel", "parallel", "arbitrary"),
        ),
    )(x, w, b2d)


class MySequentialPallas:
    """Pallas port of MySequential: applies the given blocks in order.

    Layer specs: ("linear", w, b) or ("relu",). A standalone ReLU that follows
    a Linear is fused into that Linear's matmul epilogue (one pallas_call),
    per the performance review.
    """

    def __init__(self, *layer_specs):
        fused = []
        for spec in layer_specs:
            if (
                spec[0] == "relu"
                and fused
                and fused[-1][0] == "linear"
                and not fused[-1][3]
            ):
                _, w, b, _ = fused[-1]
                fused[-1] = ("linear", w, b, True)   # fuse ReLU into producer
            elif spec[0] == "linear":
                fused.append(("linear", spec[1], spec[2], False))
            elif spec[0] == "relu":
                fused.append(("relu",))
            else:
                raise ValueError(f"unknown layer spec: {spec!r}")
        self._layers = fused

    def __call__(self, x):
        for layer in self._layers:
            if layer[0] == "linear":
                _, w, b, relu = layer
                x = fused_linear(x, w, b, apply_relu=relu)
            else:
                # Bare ReLU with no Linear producer: let XLA fuse it (a
                # standalone pallas_call at this size is pure overhead).
                x = jnp.maximum(x, 0.0)
        return x


if __name__ == "__main__":
    key = jax.random.PRNGKey(0)
    kx, kw1, kb1, kw2, kb2 = jax.random.split(key, 5)

    # Shapes consistent with the spec: x = torch.randn(2, 20); the canonical
    # MySequential example is Linear(20, 256) -> ReLU -> Linear(256, 10).
    x = jax.random.normal(kx, (2, 20), dtype=jnp.float32)
    w1 = jax.random.normal(kw1, (20, 256), dtype=jnp.float32) * 0.1
    b1 = jax.random.normal(kb1, (256,), dtype=jnp.float32) * 0.1
    w2 = jax.random.normal(kw2, (256, 10), dtype=jnp.float32) * 0.1
    b2 = jax.random.normal(kb2, (10,), dtype=jnp.float32) * 0.1

    net = MySequentialPallas(("linear", w1, b1), ("relu",), ("linear", w2, b2))
    y = net(x)
    jax.block_until_ready(y)

    # Pure-JAX reference for the same sequential forward pass.
    h_ref = jnp.maximum(x @ w1 + b1, 0.0)
    y_ref = h_ref @ w2 + b2
    assert y.shape == (2, 10) and y.dtype == jnp.float32
    assert jnp.allclose(y, y_ref, atol=2e-2, rtol=2e-2), "Pallas MySequential mismatch"

    print("KERNEL_OK")
</pallas_src>

<mosaic_0001>
module attributes {stable_mosaic.version = 11 : i64} {
  func.func @_fused_linear_kernel(%arg0: i32, %arg1: i32, %arg2: i32, %arg3: memref<2x20xf32, #tpu.memory_space<vmem>>, %arg4: memref<20x256xf32, #tpu.memory_space<vmem>>, %arg5: memref<1x256xf32, #tpu.memory_space<vmem>>, %arg6: memref<2x256xf32, #tpu.memory_space<vmem>>, %arg7: memref<2x256xf32, #tpu.memory_space<vmem>>) attributes {dimension_semantics = [#tpu.dimension_semantics<parallel>, #tpu.dimension_semantics<parallel>, #tpu.dimension_semantics<arbitrary>], iteration_bounds = array<i64: 1, 1, 1>, scalar_prefetch = 0 : i64, scratch_operands = 1 : i64, tpu.core_type = #tpu.core_type<tc>, window_params = [{transform_indices = @transform_0, window_bounds = array<i64: 2, 20>}, {transform_indices = @transform_1, window_bounds = array<i64: 20, 256>}, {transform_indices = @transform_2, window_bounds = array<i64: 1, 256>}, {transform_indices = @transform_3, window_bounds = array<i64: 2, 256>}]} {
    %c0_i32 = arith.constant 0 : i32
    %0 = arith.cmpi eq, %arg2, %c0_i32 : i32
    %1 = arith.extui %0 : i1 to i32
    %c0_i32_0 = arith.constant 0 : i32
    %2 = arith.cmpi ne, %1, %c0_i32_0 : i32
    scf.if %2 {
      %cst_10 = arith.constant 0.000000e+00 : f32
      %12 = vector.broadcast %cst_10 : f32 to vector<2x256xf32>
      %c0_11 = arith.constant 0 : index
      %c0_12 = arith.constant 0 : index
      %13 = vector.load %arg7[%c0_11, %c0_12] : memref<2x256xf32, #tpu.memory_space<vmem>>, vector<2x256xf32>
      tpu.vector_store %arg7[%c0_11, %c0_12], %12 {strides = array<i32>} : memref<2x256xf32, #tpu.memory_space<vmem>>, vector<2x256xf32>,
    } else {
    }
    %c0 = arith.constant 0 : index
    %c0_1 = arith.constant 0 : index
    %3 = vector.load %arg7[%c0, %c0_1] : memref<2x256xf32, #tpu.memory_space<vmem>>, vector<2x256xf32>
    %c0_2 = arith.constant 0 : index
    %c0_3 = arith.constant 0 : index
    %4 = vector.load %arg3[%c0_2, %c0_3] : memref<2x20xf32, #tpu.memory_space<vmem>>, vector<2x20xf32>
    %c0_4 = arith.constant 0 : index
    %c0_5 = arith.constant 0 : index
    %5 = vector.load %arg4[%c0_4, %c0_5] : memref<20x256xf32, #tpu.memory_space<vmem>>, vector<20x256xf32>
    %cst = arith.constant dense<0.000000e+00> : vector<2x256xf32>
    %6 = tpu.matmul %4, %5, %cst {dimension_numbers = #tpu.dot_dimension_numbers<[1], [0], [0], [1], [0, 0, 1, 1], [], []>} : vector<2x20xf32>, vector<20x256xf32>, vector<2x256xf32> -> vector<2x256xf32>
    %7 = arith.addf %3, %6 : vector<2x256xf32>
    %c0_6 = arith.constant 0 : index
    %c0_7 = arith.constant 0 : index
    %8 = vector.load %arg7[%c0_6, %c0_7] : memref<2x256xf32, #tpu.memory_space<vmem>>, vector<2x256xf32>
    tpu.vector_store %arg7[%c0_6, %c0_7], %7 {strides = array<i32>} : memref<2x256xf32, #tpu.memory_space<vmem>>, vector<2x256xf32>,
    %c0_i32_8 = arith.constant 0 : i32
    %9 = arith.cmpi eq, %arg2, %c0_i32_8 : i32
    %10 = arith.extui %9 : i1 to i32
    %c0_i32_9 = arith.constant 0 : i32
    %11 = arith.cmpi ne, %10, %c0_i32_9 : i32
    scf.if %11 {
      %c0_10 = arith.constant 0 : index
      %c0_11 = arith.constant 0 : index
      %12 = vector.load %arg7[%c0_10, %c0_11] : memref<2x256xf32, #tpu.memory_space<vmem>>, vector<2x256xf32>
      %c0_12 = arith.constant 0 : index
      %c0_13 = arith.constant 0 : index
      %13 = vector.load %arg5[%c0_12, %c0_13] : memref<1x256xf32, #tpu.memory_space<vmem>>, vector<1x256xf32>
      %14 = vector.broadcast %13 : vector<1x256xf32> to vector<2x256xf32>
      %15 = arith.addf %12, %14 : vector<2x256xf32>
      %cst_14 = arith.constant 0.000000e+00 : f32
      %16 = vector.broadcast %cst_14 : f32 to vector<2x256xf32>
      %17 = arith.maximumf %15, %16 : vector<2x256xf32>
      %c0_15 = arith.constant 0 : index
      %c0_16 = arith.constant 0 : index
      %18 = vector.load %arg6[%c0_15, %c0_16] : memref<2x256xf32, #tpu.memory_space<vmem>>, vector<2x256xf32>
      tpu.vector_store %arg6[%c0_15, %c0_16], %17 {strides = array<i32>} : memref<2x256xf32, #tpu.memory_space<vmem>>, vector<2x256xf32>,
    } else {
    }
    return
  }
  func.func @transform_0(%arg0: i32, %arg1: i32, %arg2: i32) -> (i32, i32) {
    %c0_i32 = arith.constant 0 : i32
    return %arg0, %arg2 : i32, i32
  }
  func.func @transform_1(%arg0: i32, %arg1: i32, %arg2: i32) -> (i32, i32) {
    %c0_i32 = arith.constant 0 : i32
    return %arg2, %arg1 : i32, i32
  }
  func.func @transform_2(%arg0: i32, %arg1: i32, %arg2: i32) -> (i32, i32) {
    %c0_i32 = arith.constant 0 : i32
    %c0_i32_0 = arith.constant 0 : i32
    return %c0_i32, %arg1 : i32, i32
  }
  func.func @transform_3(%arg0: i32, %arg1: i32, %arg2: i32) -> (i32, i32) {
    %c0_i32 = arith.constant 0 : i32
    return %arg0, %arg1 : i32, i32
  }
}

</mosaic_0001>

<bundles_post_ra>
// kernel: tpu_custom_call.1
= control target key start
LH: loop header
LB: loop body
LE: loop exit
PB: predicated region body
PF: predicated region fallthrough
CT: control target
= control target key end

     0   :  { %8 = vsyncpa [#allocation4], 0  ;;  %s306_s0 = inlined_call_operand.hbm [shape: f32[2,20], index: 0, kind: input, shape index: {}]   ;;  %s307_s1 = inlined_call_operand.hbm [shape: f32[20,256], index: 1, kind: input, shape index: {}]   ;;  %s308_s2 = inlined_call_operand.vmem [shape: f32[1,256], index: 2, kind: input, shape index: {}]   ;;  %s309_s3 = inlined_call_operand.hbm [shape: f32[2,256], index: 3, kind: output, shape index: {}]  }
   0x1   :  { %9 = vsyncpa [#allocation7], 0 }
   0x2   :  { %10 = vsyncpa [#allocation5], 0  ;;  %s267_s12 = smov [#allocation3]   ;;  %s268_s14 = smov [#allocation6]  }
   0x3   :  { %s17_s13 = sshll.u32 %s267_s12, 4  ;;  %s26_s15 = sshll.u32 %s268_s14, 4  ;;  %s18_s13 = int_to_ptr.vmem [resolvable:$true] %s17_s13  ;;  %s27_s15 = int_to_ptr.vmem [resolvable:$true] %s26_s15 }
   0x4   :  { %s209_s16 = scalar_lea.vmem %s18_s13, 32  ;;  %p214_p1 = scmp.lt.s32.totalorder %s18_s13, %s18_s13 }
   0x5   :  { %p210_p0 = scmp.ne.s32.totalorder %s18_s13, %s209_s16  ;;  %p215_p2 = scmp.lt.s32.totalorder %s209_s16, %s209_s16 }
   0x7   :  { %p216_p3 = por %p215_p2, %p214_p1 }
   0x9   :  { %p217_p4 = pnand %p216_p3, %p210_p0 }
   0xb   :  { %220 = shalt.err (!%p217_p4)
}
   0xc   :  { %20 = dma.hbm_to_vmem [thread:$0]  %s306_s0, 32, %s18_s13, [#allocation4]  }
   0xd   :  { %s229_s19 = scalar_lea.vmem %s27_s15, 768  ;;  %p234_p6 = scmp.lt.s32.totalorder %s27_s15, %s27_s15 }
   0xe   :  { %p230_p5 = scmp.ne.s32.totalorder %s27_s15, %s229_s19  ;;  %p235_p7 = scmp.lt.s32.totalorder %s229_s19, %s229_s19 }
  0x10   :  { %p236_p8 = por %p235_p7, %p234_p6 }
  0x12   :  { %p237_p9 = pnand %p236_p8, %p230_p5 }
  0x14   :  { %240 = shalt.err (!%p237_p9)
}
  0x15   :  { %s269_s20 = smov 256   ;;  %s270_s21 = smov 16  }
  0x16   :  { %32 = dma.hbm_to_vmem [thread:$0]  %s307_s1, 768, %s27_s15, [#allocation7], %s269_s20, %s269_s20, %s270_s21  }
  0x17   :  { %261 = dma.done.wait [#allocation4], 32  }
  0x18   :  { %262 = vsyncadd [#allocation4], 4294967264 }
  0x19   :  { %263 = dma.done.wait [#allocation7], 768  }
  0x1a   :  { %264 = vsyncadd [#allocation7], 4294966528  ;;  %v271_v0 = vmov 0.0   ;;  %vm58_vm0 = vcmask 1043456   ;;  %v53_v1 = vld [vmem:[#allocation6 + $0x28] sm:$0xf]  ;;  %v142_v10 = vlaneseq }
  0x1b   :  { %45 = vst [vmem:[#allocation2] sm:$0xf] %v271_v0  ;;  %129 = vmatprep.mubr.f32.mxu0 %v271_v0  ;;  %v52_v2 = vld [vmem:[#allocation6 + $0x20] sm:$0xf]  ;;  %v51_v3 = vld [vmem:[#allocation6 + $0x18] sm:$0xff]  ;;  %191 = vmatprep.subr.msk.mxu0 %vm58_vm0, %v53_v1  ;;  %v50_v4 = vld [vmem:[#allocation6 + $0x10] sm:$0xff] }
  0x1c   :  { %192 = vmatpush1.msk.msra.mxu0 %vm58_vm0, %v52_v2  ;;  %v49_v5 = vld [vmem:[#allocation6 + $0x8] sm:$0xff]  ;;  %v48_v6 = vld [vmem:[#allocation6] sm:$0xff]  ;;  %v47_v7 = vld [vmem:[#allocation3] sm:$0x3]  ;;  %vm54_vm1 = vcmask 162816   ;;  %v143_v12 = vshrl.u32 %v142_v10, 7 }
  0x1d   :  { %93 = vmatprep.subr.mxu0 %v51_v3  ;;  %v272_v8 = vmov 1983009808   ;;  %v153_v18 = vld [vmem:[%s308_s2] sm:$0x3]  ;;  %s273_s24 = smov [#allocation8]  }
  0x1e   :  { %94 = vmatpush1.msra.mxu0 %v50_v4  ;;  %v140_v9 = vunpack.c.l.s4 %v272_v8  ;;  %v157_v15 = vsub.s32 0, %v143_v12  ;;  %v161_v16 = vsub.s32 1, %v143_v12  ;;  %s181_s25 = sshll.u32 %s273_s24, 4  ;;  %s182_s25 = int_to_ptr.vmem [resolvable:$true] %s181_s25 }
  0x1f   :  { %95 = vmatprep.subr.mxu0 %v49_v5  ;;  %s241_s26 = scalar_lea.vmem %s182_s25, 64  ;;  %p246_p11 = scmp.lt.s32.totalorder %s182_s25, %s182_s25 }
  0x20   :  { %96 = vmatpush1.msra.mxu0 %v48_v6  ;;  %v141_v11 = vunpack.c.0.s8 %v140_v9  ;;  %v158_v22 = vrot.slane %v153_v18, %v157_v15  ;;  %v162_v23 = vrot.slane %v153_v18, %v161_v16  ;;  %p242_p10 = scmp.ne.s32.totalorder %s182_s25, %s241_s26  ;;  %p247_p12 = scmp.lt.s32.totalorder %s241_s26, %s241_s26 }
  0x21   :  { %193 = vmatmul.mubr.msk.f32.vlgmr.msra.gmra.mxu0 %vm54_vm1, %v47_v7 }
  0x22   :  { %v144_v14 = vsub.s32 %v141_v11, %v143_v12  ;;  %v46_v20 = vld [vmem:[#allocation2] sm:$0xf]  ;;  %v163_v25 = vcombine.low %v158_v22, %v162_v23  ;;  %p248_p13 = por %p247_p12, %p246_p11 }
  0x24   :  { %v170_v26 = vrot.slane %v163_v25, %v144_v14  ;;  %p249_p0 = pnand %p248_p13, %p242_p10 }
  0xe1   :  { %v131_v13 = vpop.f32.mrf.mxu0 }
  0xe3   :  { %v133_v17 = vpop.f32.mrf.mxu0 }
  0xe4   :  { %v138_v19 = vcombine.low %v131_v13, %v133_v17 }
  0xe6   :  { %v145_v21 = vrot.slane %v138_v19, %v144_v14 }
  0xe8   :  { %v147_v24 = vadd.f32 %v145_v21, %v46_v20 }
  0xea   :  { %148 = vst [vmem:[#allocation2] sm:$0xf] %v147_v24 }
  0xf1   :  { %v152_v27 = vld [vmem:[#allocation2] sm:$0xf] }
  0xf2   :  { %v172_v28 = vadd.f32 %v170_v26, %v152_v27 }
  0xf4   :  { %v173_v29 = vmax.f32 %v172_v28, 0.0 }
  0xf6   :  { %174 = vst [vmem:[#allocation8] sm:$0xf] %v173_v29 }
  0xf7   :  { %252 = shalt.err (!%p249_p0)
}
  0xf8   :  { %184 = dma.vmem_to_hbm [thread:$0]  %s182_s25, 64, %s309_s3, [#allocation5]  }
  0xf9   :  { %265 = dma.done.wait [#allocation5], 64  }
  0xfa   :  { %266 = vsyncadd [#allocation5], 4294967232 }
  0xfb   :  { %188 = vsyncpa [#allocation4], 1 }
  0xfc   :  { %189 = vsyncpa [#allocation7], 1 }
  0xfd   :  { %190 = vsyncpa [#allocation5], 1 }

</bundles_post_ra>
